<compile_context>
chip_gen: v7x
topology: tpu7x:2x2x1
jax: 0.10.0
libtpu: 0.0.40
codegen_flags: <defaults>
</compile_context>

<pallas_src>
import jax
import jax.numpy as jnp
from jax.experimental import pallas as pl
from jax.experimental.pallas import tpu as pltpu

EPS = 0.003
LANE = 128  # lane-dense padded hidden width


def _cdiv(a, b):
    return (a + b - 1) // b


def _round_up(x, m):
    return _cdiv(x, m) * m


def _pick_tm(n, max_tm=256):
    """Row tile: multiple of 8, >=2 grid steps when possible, low pad waste."""
    n_r = _round_up(max(n, 1), 8)
    num_tiles = max(_cdiv(n_r, max_tm), 2 if n_r > 8 else 1)
    return _round_up(_cdiv(n_r, num_tiles), 8)


def _actor_kernel(x_ref, w1_ref, b1_ref, w2_ref, b2_ref,
                  w3_ref, b3_ref, w4_ref, b4_ref, out_ref):
    """Fused 4-layer MLP + ReLU + Sigmoid on one [TM, state_dim] row tile."""
    x = x_ref[...].astype(jnp.bfloat16)                       # [TM, S] bf16 operand

    h = jnp.dot(x, w1_ref[...], preferred_element_type=jnp.float32) + b1_ref[...]
    h = jnp.maximum(h, 0.0).astype(jnp.bfloat16)               # [TM, 128]

    h = jnp.dot(h, w2_ref[...], preferred_element_type=jnp.float32) + b2_ref[...]
    h = jnp.maximum(h, 0.0).astype(jnp.bfloat16)

    h = jnp.dot(h, w3_ref[...], preferred_element_type=jnp.float32) + b3_ref[...]
    h = jnp.maximum(h, 0.0).astype(jnp.bfloat16)

    a = jnp.dot(h, w4_ref[...], preferred_element_type=jnp.float32) + b4_ref[...]
    a = jnp.maximum(a, 0.0)                                    # [TM, A] f32 (relu)
    # sigmoid(a) = 1 / (1 + exp(-a)); exp and reciprocal both hit the EUP slot.
    s = pl.reciprocal(1.0 + jnp.exp(-a), approx=True)
    out_ref[...] = jnp.minimum(s, 1.0)                          # clamp approx overshoot


def actor_forward(state, params):
    """state: [n, state_dim] f32 -> action: [n, action_dim] f32."""
    n, state_dim = state.shape
    action_dim = params["action_dim"]

    tm = _pick_tm(n)
    n_pad = _round_up(n, tm)
    x = state.astype(jnp.float32)
    if n_pad != n:
        x = jnp.pad(x, ((0, n_pad - n), (0, 0)))   # rows only, natural width

    full = lambda i: (0, 0)   # VMEM-resident weights/biases across grid steps
    in_specs = [
        pl.BlockSpec((tm, state_dim), lambda i: (i, 0)),
        pl.BlockSpec((state_dim, LANE), full),      # w1
        pl.BlockSpec((1, LANE), full),              # b1
        pl.BlockSpec((LANE, LANE), full),           # w2
        pl.BlockSpec((1, LANE), full),              # b2
        pl.BlockSpec((LANE, LANE), full),           # w3
        pl.BlockSpec((1, LANE), full),              # b3
        pl.BlockSpec((LANE, action_dim), full),     # w4
        pl.BlockSpec((1, action_dim), full),        # b4
    ]

    out = pl.pallas_call(
        _actor_kernel,
        grid=(n_pad // tm,),
        in_specs=in_specs,
        out_specs=pl.BlockSpec((tm, action_dim), lambda i: (i, 0)),
        out_shape=jax.ShapeDtypeStruct((n_pad, action_dim), jnp.float32),
        compiler_params=pltpu.CompilerParams(
            dimension_semantics=("parallel",)),
    )(x,
      params["w1"], params["b1"],
      params["w2"], params["b2"],
      params["w3"], params["b3"],
      params["w4"], params["b4"])

    return out if n_pad == n else out[:n]


def fanin_init_jax(key, shape, fanin=None):
    """Mirror of torch fanin_init: U(-1/sqrt(fanin), 1/sqrt(fanin))."""
    fanin = fanin or shape[0]
    v = 1.0 / jnp.sqrt(jnp.asarray(fanin, jnp.float32))
    return jax.random.uniform(key, shape, jnp.float32, minval=-v, maxval=v)


def init_actor_params(key, state_dim, action_dim):
    """Parameter init matching Actor.__init__.

    Weights are drawn in PyTorch [out, in] layout (fanin = weight.size()[0] =
    out_features, exactly as the torch code does), transposed to [in, out] for
    x @ W, zero-padded in the hidden (128-wide) dims only, and stored bf16 for
    the MXU.  Biases use PyTorch's default Linear init
    U(-1/sqrt(in_features), 1/sqrt(in_features)) and stay f32.
    Padding entries are exactly zero, so padded math equals unpadded math.
    """
    ks = jax.random.split(key, 8)
    layer_dims = [(state_dim, 25), (25, 50), (50, 25), (25, action_dim)]
    w_pad_shapes = [(state_dim, LANE), (LANE, LANE), (LANE, LANE), (LANE, action_dim)]
    b_widths = [LANE, LANE, LANE, action_dim]

    params = {"action_dim": action_dim}
    for i, ((din, dout), wshape, bw) in enumerate(
            zip(layer_dims, w_pad_shapes, b_widths), start=1):
        kw, kb = ks[2 * (i - 1)], ks[2 * (i - 1) + 1]
        if i < 4:
            w_oi = fanin_init_jax(kw, (dout, din))   # fanin = out_features, like torch code
        else:
            w_oi = jax.random.uniform(kw, (dout, din), jnp.float32,
                                      minval=-EPS, maxval=EPS)
        bound = 1.0 / jnp.sqrt(jnp.asarray(din, jnp.float32))
        b = jax.random.uniform(kb, (dout,), jnp.float32, minval=-bound, maxval=bound)

        w_io = jnp.transpose(w_oi)                   # [din, dout]
        w_pad = jnp.zeros(wshape, jnp.float32).at[:din, :dout].set(w_io)
        params[f"w{i}"] = w_pad.astype(jnp.bfloat16)
        params[f"b{i}"] = jnp.zeros((1, bw), jnp.float32).at[0, :dout].set(b)
    return params


def actor_reference(state, params):
    """Pure-JAX f32 reference (same bf16-stored weights, f32 math)."""
    x = state.astype(jnp.float32)
    w1 = params["w1"].astype(jnp.float32)
    w2 = params["w2"].astype(jnp.float32)
    w3 = params["w3"].astype(jnp.float32)
    w4 = params["w4"].astype(jnp.float32)
    x = jnp.maximum(x @ w1 + params["b1"], 0.0)
    x = jnp.maximum(x @ w2 + params["b2"], 0.0)
    x = jnp.maximum(x @ w3 + params["b3"], 0.0)
    a = jnp.maximum(x @ w4 + params["b4"], 0.0)
    return jax.nn.sigmoid(a)


if __name__ == "__main__":
    key = jax.random.PRNGKey(0)
    k_param, k_state, k_state2 = jax.random.split(key, 3)

    state_dim = 16
    action_dim = 4
    params = init_actor_params(k_param, state_dim, action_dim)

    # Small batch (single-tile grid).
    state_small = jax.random.normal(k_state, (2, state_dim), jnp.float32)
    act_small = jax.block_until_ready(actor_forward(state_small, params))
    ref_small = actor_reference(state_small, params)
    assert act_small.shape == (2, action_dim)
    # Tolerance covers bf16 matmul operands + EUP approximate reciprocal.
    assert jnp.allclose(act_small, ref_small, atol=3e-3, rtol=3e-3), "small-batch mismatch"

    # Larger ragged batch: exercises multi-tile grid (v7x 2-TC sharding) + row padding.
    state_big = jax.random.normal(k_state2, (200, state_dim), jnp.float32)
    act_big = jax.block_until_ready(actor_forward(state_big, params))
    ref_big = actor_reference(state_big, params)
    assert act_big.shape == (200, action_dim)
    assert jnp.allclose(act_big, ref_big, atol=3e-3, rtol=3e-3), "large-batch mismatch"

    # Range sanity: relu-then-sigmoid => [0.5, 1]; kernel clamps at 1.0.
    assert bool(jnp.all(act_big >= 0.5 - 1e-3)) and bool(jnp.all(act_big <= 1.0))

    print("KERNEL_OK")
</pallas_src>

<mosaic_0001>
module attributes {stable_mosaic.version = 11 : i64} {
  func.func @_actor_kernel(%arg0: i32, %arg1: memref<8x16xf32, #tpu.memory_space<vmem>>, %arg2: memref<16x128xbf16, #tpu.memory_space<vmem>>, %arg3: memref<1x128xf32, #tpu.memory_space<vmem>>, %arg4: memref<128x128xbf16, #tpu.memory_space<vmem>>, %arg5: memref<1x128xf32, #tpu.memory_space<vmem>>, %arg6: memref<128x128xbf16, #tpu.memory_space<vmem>>, %arg7: memref<1x128xf32, #tpu.memory_space<vmem>>, %arg8: memref<128x4xbf16, #tpu.memory_space<vmem>>, %arg9: memref<1x4xf32, #tpu.memory_space<vmem>>, %arg10: memref<8x4xf32, #tpu.memory_space<vmem>>) attributes {dimension_semantics = [#tpu.dimension_semantics<parallel>], iteration_bounds = array<i64: 1>, scalar_prefetch = 0 : i64, scratch_operands = 0 : i64, tpu.core_type = #tpu.core_type<tc>, window_params = [{transform_indices = @transform_0, window_bounds = array<i64: 8, 16>}, {pipeline_mode = #tpu.pipeline_mode<synchronous>, transform_indices = @transform_1, window_bounds = array<i64: 16, 128>}, {pipeline_mode = #tpu.pipeline_mode<synchronous>, transform_indices = @transform_2, window_bounds = array<i64: 1, 128>}, {pipeline_mode = #tpu.pipeline_mode<synchronous>, transform_indices = @transform_3, window_bounds = array<i64: 128, 128>}, {pipeline_mode = #tpu.pipeline_mode<synchronous>, transform_indices = @transform_4, window_bounds = array<i64: 1, 128>}, {pipeline_mode = #tpu.pipeline_mode<synchronous>, transform_indices = @transform_5, window_bounds = array<i64: 128, 128>}, {pipeline_mode = #tpu.pipeline_mode<synchronous>, transform_indices = @transform_6, window_bounds = array<i64: 1, 128>}, {pipeline_mode = #tpu.pipeline_mode<synchronous>, transform_indices = @transform_7, window_bounds = array<i64: 128, 4>}, {pipeline_mode = #tpu.pipeline_mode<synchronous>, transform_indices = @transform_8, window_bounds = array<i64: 1, 4>}, {transform_indices = @transform_9, window_bounds = array<i64: 8, 4>}]} {
    %c0 = arith.constant 0 : index
    %c0_0 = arith.constant 0 : index
    %0 = vector.load %arg1[%c0, %c0_0] : memref<8x16xf32, #tpu.memory_space<vmem>>, vector<8x16xf32>
    %1 = arith.truncf %0 : vector<8x16xf32> to vector<8x16xbf16>
    %c0_1 = arith.constant 0 : index
    %c0_2 = arith.constant 0 : index
    %2 = vector.load %arg2[%c0_1, %c0_2] : memref<16x128xbf16, #tpu.memory_space<vmem>>, vector<16x128xbf16>
    %cst = arith.constant dense<0.000000e+00> : vector<8x128xf32>
    %3 = tpu.matmul %1, %2, %cst {dimension_numbers = #tpu.dot_dimension_numbers<[1], [0], [0], [1], [0, 0, 1, 1], [], []>} : vector<8x16xbf16>, vector<16x128xbf16>, vector<8x128xf32> -> vector<8x128xf32>
    %c0_3 = arith.constant 0 : index
    %c0_4 = arith.constant 0 : index
    %4 = vector.load %arg3[%c0_3, %c0_4] : memref<1x128xf32, #tpu.memory_space<vmem>>, vector<1x128xf32>
    %5 = vector.broadcast %4 : vector<1x128xf32> to vector<8x128xf32>
    %6 = arith.addf %3, %5 : vector<8x128xf32>
    %cst_5 = arith.constant 0.000000e+00 : f32
    %7 = vector.broadcast %cst_5 : f32 to vector<8x128xf32>
    %8 = arith.maximumf %6, %7 : vector<8x128xf32>
    %9 = arith.truncf %8 : vector<8x128xf32> to vector<8x128xbf16>
    %c0_6 = arith.constant 0 : index
    %c0_7 = arith.constant 0 : index
    %10 = vector.load %arg4[%c0_6, %c0_7] : memref<128x128xbf16, #tpu.memory_space<vmem>>, vector<128x128xbf16>
    %cst_8 = arith.constant dense<0.000000e+00> : vector<8x128xf32>
    %11 = tpu.matmul %9, %10, %cst_8 {dimension_numbers = #tpu.dot_dimension_numbers<[1], [0], [0], [1], [0, 0, 1, 1], [], []>} : vector<8x128xbf16>, vector<128x128xbf16>, vector<8x128xf32> -> vector<8x128xf32>
    %c0_9 = arith.constant 0 : index
    %c0_10 = arith.constant 0 : index
    %12 = vector.load %arg5[%c0_9, %c0_10] : memref<1x128xf32, #tpu.memory_space<vmem>>, vector<1x128xf32>
    %13 = vector.broadcast %12 : vector<1x128xf32> to vector<8x128xf32>
    %14 = arith.addf %11, %13 : vector<8x128xf32>
    %cst_11 = arith.constant 0.000000e+00 : f32
    %15 = vector.broadcast %cst_11 : f32 to vector<8x128xf32>
    %16 = arith.maximumf %14, %15 : vector<8x128xf32>
    %17 = arith.truncf %16 : vector<8x128xf32> to vector<8x128xbf16>
    %c0_12 = arith.constant 0 : index
    %c0_13 = arith.constant 0 : index
    %18 = vector.load %arg6[%c0_12, %c0_13] : memref<128x128xbf16, #tpu.memory_space<vmem>>, vector<128x128xbf16>
    %cst_14 = arith.constant dense<0.000000e+00> : vector<8x128xf32>
    %19 = tpu.matmul %17, %18, %cst_14 {dimension_numbers = #tpu.dot_dimension_numbers<[1], [0], [0], [1], [0, 0, 1, 1], [], []>} : vector<8x128xbf16>, vector<128x128xbf16>, vector<8x128xf32> -> vector<8x128xf32>
    %c0_15 = arith.constant 0 : index
    %c0_16 = arith.constant 0 : index
    %20 = vector.load %arg7[%c0_15, %c0_16] : memref<1x128xf32, #tpu.memory_space<vmem>>, vector<1x128xf32>
    %21 = vector.broadcast %20 : vector<1x128xf32> to vector<8x128xf32>
    %22 = arith.addf %19, %21 : vector<8x128xf32>
    %cst_17 = arith.constant 0.000000e+00 : f32
    %23 = vector.broadcast %cst_17 : f32 to vector<8x128xf32>
    %24 = arith.maximumf %22, %23 : vector<8x128xf32>
    %25 = arith.truncf %24 : vector<8x128xf32> to vector<8x128xbf16>
    %c0_18 = arith.constant 0 : index
    %c0_19 = arith.constant 0 : index
    %26 = vector.load %arg8[%c0_18, %c0_19] : memref<128x4xbf16, #tpu.memory_space<vmem>>, vector<128x4xbf16>
    %cst_20 = arith.constant dense<0.000000e+00> : vector<8x4xf32>
    %27 = tpu.matmul %25, %26, %cst_20 {dimension_numbers = #tpu.dot_dimension_numbers<[1], [0], [0], [1], [0, 0, 1, 1], [], []>} : vector<8x128xbf16>, vector<128x4xbf16>, vector<8x4xf32> -> vector<8x4xf32>
    %c0_21 = arith.constant 0 : index
    %c0_22 = arith.constant 0 : index
    %28 = vector.load %arg9[%c0_21, %c0_22] : memref<1x4xf32, #tpu.memory_space<vmem>>, vector<1x4xf32>
    %29 = vector.broadcast %28 : vector<1x4xf32> to vector<8x4xf32>
    %30 = arith.addf %27, %29 : vector<8x4xf32>
    %cst_23 = arith.constant 0.000000e+00 : f32
    %31 = vector.broadcast %cst_23 : f32 to vector<8x4xf32>
    %32 = arith.maximumf %30, %31 : vector<8x4xf32>
    %cst_24 = arith.constant 0.000000e+00 : f32
    %33 = vector.broadcast %cst_24 : f32 to vector<8x4xf32>
    %34 = arith.subf %33, %32 : vector<8x4xf32>
    %35 = math.exp %34 : vector<8x4xf32>
    %cst_25 = arith.constant 1.000000e+00 : f32
    %36 = vector.broadcast %cst_25 : f32 to vector<8x4xf32>
    %37 = arith.addf %36, %35 : vector<8x4xf32>
    %38 = tpu.reciprocal %37 {approx = true} : vector<8x4xf32> -> vector<8x4xf32>
    %cst_26 = arith.constant 1.000000e+00 : f32
    %39 = vector.broadcast %cst_26 : f32 to vector<8x4xf32>
    %40 = arith.minimumf %38, %39 : vector<8x4xf32>
    %c0_27 = arith.constant 0 : index
    %c0_28 = arith.constant 0 : index
    %41 = vector.load %arg10[%c0_27, %c0_28] : memref<8x4xf32, #tpu.memory_space<vmem>>, vector<8x4xf32>
    tpu.vector_store %arg10[%c0_27, %c0_28], %40 {strides = array<i32>} : memref<8x4xf32, #tpu.memory_space<vmem>>, vector<8x4xf32>,
    return
  }
  func.func @transform_0(%arg0: i32) -> (i32, i32) {
    %c0_i32 = arith.constant 0 : i32
    %c0_i32_0 = arith.constant 0 : i32
    return %arg0, %c0_i32 : i32, i32
  }
  func.func @transform_1(%arg0: i32) -> (i32, i32) {
    %c0_i32 = arith.constant 0 : i32
    %c0_i32_0 = arith.constant 0 : i32
    %c0_i32_1 = arith.constant 0 : i32
    return %c0_i32, %c0_i32_0 : i32, i32
  }
  func.func @transform_2(%arg0: i32) -> (i32, i32) {
    %c0_i32 = arith.constant 0 : i32
    %c0_i32_0 = arith.constant 0 : i32
    %c0_i32_1 = arith.constant 0 : i32
    return %c0_i32, %c0_i32_0 : i32, i32
  }
  func.func @transform_3(%arg0: i32) -> (i32, i32) {
    %c0_i32 = arith.constant 0 : i32
    %c0_i32_0 = arith.constant 0 : i32
    %c0_i32_1 = arith.constant 0 : i32
    return %c0_i32, %c0_i32_0 : i32, i32
  }
  func.func @transform_4(%arg0: i32) -> (i32, i32) {
    %c0_i32 = arith.constant 0 : i32
    %c0_i32_0 = arith.constant 0 : i32
    %c0_i32_1 = arith.constant 0 : i32
    return %c0_i32, %c0_i32_0 : i32, i32
  }
  func.func @transform_5(%arg0: i32) -> (i32, i32) {
    %c0_i32 = arith.constant 0 : i32
    %c0_i32_0 = arith.constant 0 : i32
    %c0_i32_1 = arith.constant 0 : i32
    return %c0_i32, %c0_i32_0 : i32, i32
  }
  func.func @transform_6(%arg0: i32) -> (i32, i32) {
    %c0_i32 = arith.constant 0 : i32
    %c0_i32_0 = arith.constant 0 : i32
    %c0_i32_1 = arith.constant 0 : i32
    return %c0_i32, %c0_i32_0 : i32, i32
  }
  func.func @transform_7(%arg0: i32) -> (i32, i32) {
    %c0_i32 = arith.constant 0 : i32
    %c0_i32_0 = arith.constant 0 : i32
    %c0_i32_1 = arith.constant 0 : i32
    return %c0_i32, %c0_i32_0 : i32, i32
  }
  func.func @transform_8(%arg0: i32) -> (i32, i32) {
    %c0_i32 = arith.constant 0 : i32
    %c0_i32_0 = arith.constant 0 : i32
    %c0_i32_1 = arith.constant 0 : i32
    return %c0_i32, %c0_i32_0 : i32, i32
  }
  func.func @transform_9(%arg0: i32) -> (i32, i32) {
    %c0_i32 = arith.constant 0 : i32
    %c0_i32_0 = arith.constant 0 : i32
    return %arg0, %c0_i32 : i32, i32
  }
}

</mosaic_0001>

<bundles_post_ra>
// kernel: tpu_custom_call.1
= control target key start
LH: loop header
LB: loop body
LE: loop exit
PB: predicated region body
PF: predicated region fallthrough
CT: control target
= control target key end

     0   :  { %14 = vsyncpa [#allocation3], 0  ;;  %s863_s0 = inlined_call_operand.vmem [shape: f32[8,16], index: 0, kind: input, shape index: {}]   ;;  %s864_s1 = inlined_call_operand.hbm [shape: bf16[16,128], index: 1, kind: input, shape index: {}]   ;;  %s865_s2 = inlined_call_operand.vmem [shape: f32[1,128], index: 2, kind: input, shape index: {}]   ;;  %s866_s3 = inlined_call_operand.vmem [shape: bf16[128,128], index: 3, kind: input, shape index: {}]   ;;  %s867_s4 = inlined_call_operand.vmem [shape: f32[1,128], index: 4, kind: input, shape index: {}]   ;;  %s868_s5 = inlined_call_operand.hbm [shape: bf16[128,128], index: 5, kind: input, shape index: {}]   ;;  %s869_s6 = inlined_call_operand.vmem [shape: f32[1,128], index: 6, kind: input, shape index: {}]   ;;  %s870_s7 = inlined_call_operand.vmem [shape: bf16[128,4], index: 7, kind: input, shape index: {}]   ;;  %s871_s8 = inlined_call_operand.vmem [shape: f32[1,4], index: 8, kind: input, shape index: {}]   ;;  %s872_s9 = inlined_call_operand.vmem [shape: f32[8,4], index: 9, kind: output, shape index: {}]  }
   0x1   :  { %15 = vsyncpa [#allocation5], 0  ;;  %s684_s30 = smov [#allocation2]   ;;  %s636_s13 = scalar_lea.hbm %s864_s1, 128 }
   0x2   :  { %s23_s10 = sshll.u32 %s684_s30, 4  ;;  %p637_p0 = scmp.ne.s32.totalorder %s864_s1, %s636_s13  ;;  %s24_s10 = int_to_ptr.vmem [resolvable:$true] %s23_s10 }
   0x3   :  { %p640_p1 = scmp.lt.u32.totalorder %s636_s13, %s864_s1 }
   0x5   :  { %p642_p2 = pnand %p640_p1, %p637_p0 }
   0x7   :  { %645 = shalt.err (!%p642_p2)
}
   0x8   :  { %s646_s18 = scalar_lea.vmem %s24_s10, 128  ;;  %p651_p4 = scmp.lt.s32.totalorder %s24_s10, %s24_s10 }
   0x9   :  { %p647_p3 = scmp.ne.s32.totalorder %s24_s10, %s646_s18  ;;  %p652_p5 = scmp.lt.s32.totalorder %s646_s18, %s646_s18 }
   0xb   :  { %p653_p6 = por %p652_p5, %p651_p4 }
   0xd   :  { %p654_p7 = pnand %p653_p6, %p647_p3 }
   0xf   :  { %657 = shalt.err (!%p654_p7)
}
  0x10   :  { %s685_s19 = smov 64   ;;  %s686_s20 = smov 4  }
  0x11   :  { %29 = dma.hbm_to_vmem [thread:$0]  %s864_s1, 128, %s24_s10, [#allocation3], %s685_s19, %s685_s19, %s686_s20  }
  0x12   :  { %s687_s23 = smov [#allocation4]   ;;  %s658_s27 = scalar_lea.hbm %s868_s5, 1024 }
  0x13   :  { %s41_s24 = sshll.u32 %s687_s23, 4  ;;  %p659_p8 = scmp.ne.s32.totalorder %s868_s5, %s658_s27  ;;  %s42_s24 = int_to_ptr.vmem [resolvable:$true] %s41_s24 }
  0x14   :  { %p662_p9 = scmp.lt.u32.totalorder %s658_s27, %s868_s5 }
  0x16   :  { %p664_p10 = pnand %p662_p9, %p659_p8 }
  0x18   :  { %667 = shalt.err (!%p664_p10)
}
  0x19   :  { %s668_s12 = scalar_lea.vmem %s42_s24, 1024  ;;  %p673_p12 = scmp.lt.s32.totalorder %s42_s24, %s42_s24 }
  0x1a   :  { %p669_p11 = scmp.ne.s32.totalorder %s42_s24, %s668_s12  ;;  %p674_p13 = scmp.lt.s32.totalorder %s668_s12, %s668_s12 }
  0x1c   :  { %p675_p0 = por %p674_p13, %p673_p12 }
  0x1e   :  { %p676_p1 = pnand %p675_p0, %p669_p11 }
  0x20   :  { %679 = shalt.err (!%p676_p1)
}
  0x21   :  { %47 = dma.hbm_to_vmem [thread:$0]  %s868_s5, 1024, %s42_s24, [#allocation5], %s685_s19, %s685_s19, %s686_s20  }
  0x22   :  { %680 = dma.done.wait [#allocation3], 128  }
  0x23   :  { %681 = vsyncadd [#allocation3], 4294967168 }
  0x24   :  { %682 = dma.done.wait [#allocation5], 1024  }
  0x25   :  { %683 = vsyncadd [#allocation5], 4294966272  ;;  %v688_v0 = vmov 0.0   ;;  %vm689_vm0 = vmmov 0   ;;  %v607_v1 = vld [vmem:[#allocation2] sm:$0xff]   ;;  %vm78_vm1 = vcmask 130048  }
  0x26   :  { %535 = vmatprep.subr.bf16.mxu0 %v688_v0  ;;  %537 = vmatprep.mubr.msk.bf16.mxu0 %vm689_vm0, %v688_v0  ;;  %v61_v2 = vld [vmem:[%s863_s0] sm:$0xff]  ;;  %v609_v5 = vld [vmem:[%s866_s3 + $0x8] sm:$0xff]   ;;  %v610_v6 = vld [vmem:[%s866_s3 + $0x10] sm:$0xff]   ;;  %vm468_vm2 = vcmask 31744  }
  0x27   :  { %541 = vmatprep.subr.bf16.mxu1 %v688_v0  ;;  %557 = vmatprep.mubr.msk.bf16.mxu1 %vm689_vm0, %v688_v0  ;;  %v62_v3 = vpack.c.bf16 %v61_v2, %v61_v2  ;;  %v608_v4 = vld [vmem:[%s866_s3] sm:$0xff]   ;;  %v611_v7 = vld [vmem:[%s866_s3 + $0x18] sm:$0xff]   ;;  %v613_v9 = vld [vmem:[%s866_s3 + $0x28] sm:$0xff]  }
  0x28   :  { %536 = vmatpush3.bf16.msra.mxu0 %v607_v1  ;;  %542 = vmatpush3.bf16.msra.mxu1 %v608_v4  ;;  %v612_v8 = vld [vmem:[%s866_s3 + $0x20] sm:$0xff]   ;;  %v614_v10 = vld [vmem:[%s866_s3 + $0x30] sm:$0xff]   ;;  %v615_v11 = vld [vmem:[%s866_s3 + $0x38] sm:$0xff]  }
  0x29   :  { %561 = vmatprep.subr.bf16.mxu0 %v688_v0  ;;  %543 = vmatprep.subr.bf16.mxu1 %v688_v0  ;;  %v616_v12 = vld [vmem:[#allocation4] sm:$0xff]   ;;  %v617_v13 = vld [vmem:[#allocation4 + $0x8] sm:$0xff]   ;;  %v618_v14 = vld [vmem:[#allocation4 + $0x10] sm:$0xff]  }
  0x2a   :  { %v619_v15 = vld [vmem:[#allocation4 + $0x18] sm:$0xff]   ;;  %v620_v16 = vld [vmem:[#allocation4 + $0x20] sm:$0xff]   ;;  %v621_v17 = vld [vmem:[#allocation4 + $0x28] sm:$0xff]  }
  0x2b   :  { %538 = vmatmul.mubr.msk.bf16.vlgmr.msra.gmra.mrb[0].mxu0 %vm78_vm1, %v62_v3  ;;  %v476_v18 = vld [vmem:[%s865_s2] ss:$0 sm:$0xff]  ;;  %v622_v26 = vld [vmem:[#allocation4 + $0x30] sm:$0xff]   ;;  %v625_v29 = vld [vmem:[%s870_s7 + $0x8] sm:$0xff]  }
  0x2c   :  { %577 = vmatprep.mubr.msk.bf16.mxu0 %vm689_vm0, %v688_v0  ;;  %544 = vmatpush3.bf16.msra.mxu1 %v609_v5  ;;  %v623_v27 = vld [vmem:[#allocation4 + $0x38] sm:$0xff]   ;;  %v626_v30 = vld [vmem:[%s870_s7 + $0x10] sm:$0xff]   ;;  %v627_v31 = vld [vmem:[%s870_s7 + $0x18] sm:$0xff]  }
  0x2d   :  { %545 = vmatprep.subr.bf16.mxu1 %v688_v0  ;;  %562 = vmatpush3.bf16.msra.mxu0 %v616_v12  ;;  %v624_v28 = vld [vmem:[%s870_s7] sm:$0xff]   ;;  %v629_v33 = vld [vmem:[%s870_s7 + $0x28] sm:$0xff]   ;;  %v630_v42 = vld [vmem:[%s870_s7 + $0x30] sm:$0xff]  }
  0x2e   :  { %563 = vmatprep.subr.bf16.mxu0 %v688_v0  ;;  %v628_v32 = vld [vmem:[%s870_s7 + $0x20] sm:$0xff]   ;;  %v631_v43 = vld [vmem:[%s870_s7 + $0x38] sm:$0xff]  }
  0x2f   :  { %v479_v34 = vld [vmem:[%s867_s4] ss:$0 sm:$0xff] }
  0x30   :  { %546 = vmatpush3.bf16.msra.mxu1 %v610_v6  ;;  %v488_v44 = vld [vmem:[%s869_s6] ss:$0 sm:$0xff] }
  0x31   :  { %547 = vmatprep.subr.bf16.mxu1 %v688_v0  ;;  %564 = vmatpush3.bf16.msra.mxu0 %v617_v13  ;;  %v497_v52 = vld [vmem:[%s871_s8] ss:$0 sm:$0xff] }
  0x32   :  { %565 = vmatprep.subr.bf16.mxu0 %v688_v0 }
  0x34   :  { %548 = vmatpush3.bf16.msra.mxu1 %v611_v7 }
  0x35   :  { %549 = vmatprep.subr.bf16.mxu1 %v688_v0  ;;  %566 = vmatpush3.bf16.msra.mxu0 %v618_v14 }
  0x36   :  { %567 = vmatprep.subr.bf16.mxu0 %v688_v0 }
  0x38   :  { %550 = vmatpush3.bf16.msra.mxu1 %v612_v8 }
  0x39   :  { %551 = vmatprep.subr.bf16.mxu1 %v688_v0  ;;  %568 = vmatpush3.bf16.msra.mxu0 %v619_v15 }
  0x3a   :  { %569 = vmatprep.subr.bf16.mxu0 %v688_v0 }
  0x3c   :  { %552 = vmatpush3.bf16.msra.mxu1 %v613_v9 }
  0x3d   :  { %553 = vmatprep.subr.bf16.mxu1 %v688_v0  ;;  %570 = vmatpush3.bf16.msra.mxu0 %v620_v16 }
  0x3e   :  { %571 = vmatprep.subr.bf16.mxu0 %v688_v0 }
  0x40   :  { %554 = vmatpush3.bf16.msra.mxu1 %v614_v10 }
  0x41   :  { %555 = vmatprep.subr.bf16.mxu1 %v688_v0  ;;  %572 = vmatpush3.bf16.msra.mxu0 %v621_v17 }
  0x42   :  { %573 = vmatprep.subr.bf16.mxu0 %v688_v0 }
  0x44   :  { %556 = vmatpush3.bf16.msra.mxu1 %v615_v11 }
  0x45   :  { %581 = vmatprep.subr.bf16.mxu1 %v688_v0  ;;  %574 = vmatpush3.bf16.msra.mxu0 %v622_v26 }
  0x46   :  { %575 = vmatprep.subr.bf16.mxu0 %v688_v0 }
  0x49   :  { %576 = vmatpush3.bf16.msra.mxu0 %v623_v27 }
  0xfe   :  { %v116_v19 = vpop.f32.mrb[0].mxu0 }
  0xff   :  { %v117_v20 = vadd.f32 %v476_v18, %v116_v19  ;;  %v539_v21 = vpop.f32.mrb[1].mxu0 }
 0x100   :  { %v119_v22 = vpop.f32.mrb[2].mxu0 }
 0x101   :  { %v122_v23 = vmax.f32 %v117_v20, 0.0  ;;  %v540_v24 = vpop.f32.mrb[3].mxu0 }
 0x103   :  { %v123_v25 = vpack.c.bf16 %v122_v23, %v122_v23 }
 0x105   :  { %558 = vmatmul.mubr.bf16.vlgmr.msra.gmra.mrb[0].mxu1 %v123_v25 }
 0x106   :  { %597 = vmatprep.mubr.msk.bf16.mxu1 %vm689_vm0, %v688_v0  ;;  %582 = vmatpush3.bf16.msra.mxu1 %v624_v28 }
 0x107   :  { %583 = vmatprep.subr.bf16.mxu1 %v688_v0 }
 0x10a   :  { %584 = vmatpush3.bf16.msra.mxu1 %v625_v29 }
 0x10b   :  { %585 = vmatprep.subr.bf16.mxu1 %v688_v0 }
 0x10e   :  { %586 = vmatpush3.bf16.msra.mxu1 %v626_v30 }
 0x10f   :  { %587 = vmatprep.subr.bf16.mxu1 %v688_v0 }
 0x112   :  { %588 = vmatpush3.bf16.msra.mxu1 %v627_v31 }
 0x113   :  { %589 = vmatprep.subr.bf16.mxu1 %v688_v0 }
 0x116   :  { %590 = vmatpush3.bf16.msra.mxu1 %v628_v32 }
 0x117   :  { %591 = vmatprep.subr.bf16.mxu1 %v688_v0 }
 0x11a   :  { %592 = vmatpush3.bf16.msra.mxu1 %v629_v33 }
 0x11b   :  { %593 = vmatprep.subr.bf16.mxu1 %v688_v0 }
 0x11e   :  { %594 = vmatpush3.bf16.msra.mxu1 %v630_v42 }
 0x11f   :  { %595 = vmatprep.subr.bf16.mxu1 %v688_v0 }
 0x122   :  { %596 = vmatpush3.bf16.msra.mxu1 %v631_v43 }
 0x1d8   :  { %v229_v35 = vpop.f32.mrb[0].mxu1 }
 0x1d9   :  { %v230_v36 = vadd.f32 %v479_v34, %v229_v35  ;;  %v559_v37 = vpop.f32.mrb[1].mxu1 }
 0x1da   :  { %v232_v38 = vpop.f32.mrb[2].mxu1 }
 0x1db   :  { %v235_v39 = vmax.f32 %v230_v36, 0.0  ;;  %v560_v40 = vpop.f32.mrb[3].mxu1 }
 0x1dd   :  { %v236_v41 = vpack.c.bf16 %v235_v39, %v235_v39 }
 0x1df   :  { %578 = vmatmul.mubr.bf16.vlgmr.msra.gmra.mrb[4].mxu0 %v236_v41 }
 0x2b2   :  { %v342_v45 = vpop.f32.mrb[4].mxu0 }
 0x2b3   :  { %v343_v46 = vadd.f32 %v488_v44, %v342_v45  ;;  %v579_v47 = vpop.f32.mrb[5].mxu0 }
 0x2b4   :  { %v345_v48 = vpop.f32.mrb[6].mxu0 }
 0x2b5   :  { %v348_v49 = vmax.f32 %v343_v46, 0.0  ;;  %v580_v50 = vpop.f32.mrb[7].mxu0 }
 0x2b7   :  { %v349_v51 = vpack.c.bf16 %v348_v49, %v348_v49 }
 0x2b9   :  { %598 = vmatmul.mubr.bf16.vlgmr.msra.gmra.mrb[4].mxu1 %v349_v51 }
 0x38c   :  { %v455_v53 = vpop.f32.mrb[4].mxu1 }
 0x38d   :  { %v456_v54 = vadd.f32 %v497_v52, %v455_v53  ;;  %v599_v55 = vpop.f32.mrb[5].mxu1 }
 0x38e   :  { %v458_v56 = vpop.f32.mrb[6].mxu1 }
 0x38f   :  { %v461_v57 = vmax.f32 %v456_v54, 0.0  ;;  %v600_v58 = vpop.f32.mrb[7].mxu1 }
 0x391   :  { %v462_v59 = vsub.f32 0.0, %v461_v57 }
 0x393   :  { %v463_v60 = vmul.f32 1.442695, %v462_v59 }
 0x395   :  { %632 = vpow2.f32 %v463_v60 }
 0x39f   :  { %v633_v61 = vpop.eup %632 }
 0x3a0   :  { %v465_v62 = vadd.f32 1.0, %v633_v61 }
 0x3a2   :  { %634 = vrcp.f32 %v465_v62 }
 0x3ac   :  { %v635_v63 = vpop.eup %634 }
 0x3ad   :  { %v467_v0 = vmin.f32 %v635_v63, 1.0 }
 0x3af   :  { %469 = vst.msk [vmem:[%s872_s9] sm:$0xff] %vm468_vm2, %v467_v0 }
 0x3b0   :  { %474 = vsyncpa [#allocation3], 1 }
 0x3b1   :  { %475 = vsyncpa [#allocation5], 1 }

</bundles_post_ra>
